<compile_context>
chip_gen: v6e
topology: v6e:2x2x1
jax: 0.10.0
libtpu: 0.0.40
codegen_flags: <defaults>
</compile_context>

<pallas_src>
import functools

import jax
import jax.numpy as jnp
from jax.experimental import pallas as pl
from jax.experimental.pallas import tpu as pltpu


# --------------------------------------------------------------------------
# Generation-aware VMEM budget.
# --------------------------------------------------------------------------
@functools.lru_cache(maxsize=1)
def _vmem_budget_bytes() -> int:
    """Usable per-core VMEM (~75% of physical) for the current TPU generation."""
    cap = 64 * 1024 * 1024  # conservative default == v7x TensorCore VMEM
    try:
        info = pltpu.get_tpu_info()
        cap_attr = getattr(info, "vmem_capacity_bytes", None)
        if cap_attr:
            cap = int(cap_attr)
    except Exception:
        pass
    return int(cap * 0.75)


# --------------------------------------------------------------------------
# Resident (whole-slab) path: one program per batch element.
# --------------------------------------------------------------------------
def _gln_resident_kernel(x_ref, gamma_ref, beta_ref, o_ref, *, eps, n):
    # x_ref: (C, T) slab for the current batch element.
    x = x_ref[...].astype(jnp.float32)

    # Single pass: sum and sum-of-squares (no slab-sized `diff` temporary).
    s = jnp.sum(x)
    ss = jnp.sum(x * x)

    mean = s / n
    # sum((x - mean)^2) == ss - s*mean ; unbiased (Bessel) divisor (n - 1).
    # Clamp: E[x^2] - mean^2 in f32 can go slightly negative -> NaN from sqrt.
    var = jnp.maximum((ss - s * mean) / (n - 1), 0.0)
    inv = 1.0 / (jnp.sqrt(var) + eps)          # eps OUTSIDE sqrt, as in torch

    gamma = gamma_ref[...].astype(jnp.float32)  # (C, 1), lane-broadcast over T
    beta = beta_ref[...].astype(jnp.float32)
    scale = gamma * inv                         # (C, 1)
    shift = beta - mean * scale                 # (C, 1)

    # Re-read x_ref so the f32 slab need not stay live across both the
    # reduction and the FMA (frees ~one f32 slab of peak VMEM; VMEM re-reads
    # are cheap while the kernel is HBM-bound).
    o_ref[...] = (x_ref[...].astype(jnp.float32) * scale + shift).astype(o_ref.dtype)


def _gln_resident(x, gamma, beta, eps, vmem_limit):
    b, c, t = x.shape
    kernel = functools.partial(_gln_resident_kernel, eps=eps, n=c * t)
    return pl.pallas_call(
        kernel,
        out_shape=jax.ShapeDtypeStruct((b, c, t), x.dtype),
        grid_spec=pltpu.PrefetchScalarGridSpec(
            num_scalar_prefetch=0,
            grid=(b,),
            in_specs=[
                pl.BlockSpec((None, c, t), lambda i: (i, 0, 0)),
                pl.BlockSpec((c, 1), lambda i: (0, 0)),
                pl.BlockSpec((c, 1), lambda i: (0, 0)),
            ],
            out_specs=pl.BlockSpec((None, c, t), lambda i: (i, 0, 0)),
        ),
        compiler_params=pltpu.CompilerParams(
            dimension_semantics=("parallel",),
            vmem_limit_bytes=vmem_limit),
    )(x, gamma, beta)


# --------------------------------------------------------------------------
# Tiled two-pass path: grid=(B, T // tile_t).
# --------------------------------------------------------------------------
def _gln_stats_kernel(x_ref, sum_ref, ssq_ref, acc_s_ref, acc_q_ref, *, tile_t):
    # x_ref: (C, tile_t) tile; sum_ref/ssq_ref: (1, 1) resident outputs;
    # acc_*: (C, 128) f32 VMEM scratch partial accumulators.
    @pl.when(pl.program_id(1) == 0)
    def _():
        acc_s_ref[...] = jnp.zeros_like(acc_s_ref)
        acc_q_ref[...] = jnp.zeros_like(acc_q_ref)

    # Vreg-shaped partial sums: per-tile work is pure VPU adds on 128-lane
    # chunks (no full f32 tile materialized, no per-tile XLU reduction or
    # masked (1,1) store).  Also improves summation accuracy.
    for k in range(tile_t // 128):
        blk = x_ref[:, k * 128:(k + 1) * 128].astype(jnp.float32)
        acc_s_ref[...] = acc_s_ref[...] + blk
        acc_q_ref[...] = acc_q_ref[...] + blk * blk

    # Cross-lane/sublane reduction only once per batch element.
    @pl.when(pl.program_id(1) == pl.num_programs(1) - 1)
    def _():
        sum_ref[...] = jnp.sum(acc_s_ref[...], keepdims=True)
        ssq_ref[...] = jnp.sum(acc_q_ref[...], keepdims=True)


def _gln_norm_kernel(x_ref, sum_ref, ssq_ref, gamma_ref, beta_ref, o_ref, *, eps, n):
    # Stats -> affine folded in-kernel (O(C) VPU work per tile): removes the
    # tiny XLA launches and the (B, C, 1) HBM round-trip between the passes.
    s = sum_ref[...]                                  # (1, 1) f32
    ss = ssq_ref[...]
    mean = s / n
    var = jnp.maximum((ss - s * mean) / (n - 1), 0.0)  # Bessel; clamp >= 0
    inv = 1.0 / (jnp.sqrt(var) + eps)                  # eps outside sqrt
    gamma = gamma_ref[...].astype(jnp.float32)         # (C, 1)
    beta = beta_ref[...].astype(jnp.float32)
    scale = gamma * inv                                # (C, 1)
    shift = beta - mean * scale                        # (C, 1)
    x = x_ref[...].astype(jnp.float32)
    o_ref[...] = (x * scale + shift).astype(o_ref.dtype)


def _gln_tiled(x, gamma, beta, eps, tile_t, n, vmem_limit):
    b, c, t = x.shape
    nt = t // tile_t

    # Pass 1: per-batch sum and sum-of-squares.
    sums, ssqs = pl.pallas_call(
        functools.partial(_gln_stats_kernel, tile_t=tile_t),
        out_shape=(jax.ShapeDtypeStruct((b, 1, 1), jnp.float32),
                   jax.ShapeDtypeStruct((b, 1, 1), jnp.float32)),
        grid_spec=pltpu.PrefetchScalarGridSpec(
            num_scalar_prefetch=0,
            grid=(b, nt),
            in_specs=[pl.BlockSpec((None, c, tile_t), lambda i, j: (i, 0, j))],
            out_specs=[pl.BlockSpec((None, 1, 1), lambda i, j: (i, 0, 0)),
                       pl.BlockSpec((None, 1, 1), lambda i, j: (i, 0, 0))],
            scratch_shapes=[pltpu.VMEM((c, 128), jnp.float32),
                            pltpu.VMEM((c, 128), jnp.float32)],
        ),
        compiler_params=pltpu.CompilerParams(
            dimension_semantics=("parallel", "arbitrary"),
            vmem_limit_bytes=vmem_limit),
    )(x)

    # Pass 2: out = x * scale + shift over the same (C, tile_t) tiling,
    # with the affine derived in-kernel from (sums, ssqs, gamma, beta).
    return pl.pallas_call(
        functools.partial(_gln_norm_kernel, eps=eps, n=n),
        out_shape=jax.ShapeDtypeStruct((b, c, t), x.dtype),
        grid_spec=pltpu.PrefetchScalarGridSpec(
            num_scalar_prefetch=0,
            grid=(b, nt),
            in_specs=[
                pl.BlockSpec((None, c, tile_t), lambda i, j: (i, 0, j)),
                pl.BlockSpec((None, 1, 1), lambda i, j: (i, 0, 0)),
                pl.BlockSpec((None, 1, 1), lambda i, j: (i, 0, 0)),
                pl.BlockSpec((c, 1), lambda i, j: (0, 0)),
                pl.BlockSpec((c, 1), lambda i, j: (0, 0)),
            ],
            out_specs=pl.BlockSpec((None, c, tile_t), lambda i, j: (i, 0, j)),
        ),
        compiler_params=pltpu.CompilerParams(
            dimension_semantics=("parallel", "parallel"),
            vmem_limit_bytes=vmem_limit),
    )(x, sums, ssqs, gamma, beta)


def _choose_tile_t(t, c, itemsize, vmem_budget):
    """Largest tile_t (multiple of 128, divides t, <= 2048 lanes) whose
    double-buffered blocks + f32 temps fit the scoped-VMEM budget."""
    best = 128
    for d in range(128, min(t, 2048) + 1, 128):
        if t % d:
            continue
        blk = c * d * itemsize
        blk_f32 = c * d * 4
        need = 4 * blk + 2 * blk_f32 + (2 << 20)   # 2x in + 2x out + f32 temps + margin
        if blk_f32 <= (2 << 20) and need <= vmem_budget:
            best = d
    return best


def _gln_tiled_dispatch(x, gamma, beta, eps, vmem_budget):
    b, c, t = x.shape
    n = c * t                                     # true element count for the stats
    t_pad = -(-t // 128) * 128
    if t_pad != t:
        # Zero-padding T does not perturb sum / sum-of-squares; the padded
        # output columns are sliced off below.
        x = jnp.pad(x, ((0, 0), (0, 0), (0, t_pad - t)))
    tile_t = _choose_tile_t(t_pad, c, x.dtype.itemsize, vmem_budget)
    out = _gln_tiled(x, gamma, beta, eps, tile_t, n, vmem_budget)
    return out if t_pad == t else out[:, :, :t]


# --------------------------------------------------------------------------
# Public entry point (generation- and dtype-aware dispatch).
# --------------------------------------------------------------------------
def global_layer_norm(x: jax.Array, gamma: jax.Array, beta: jax.Array,
                      eps: float = 1e-8) -> jax.Array:
    """x: (B, C, T), gamma/beta: (C, 1). Returns (B, C, T) in x.dtype."""
    _, c, t = x.shape
    budget = _vmem_budget_bytes()
    slab = c * t * x.dtype.itemsize
    slab_f32 = c * t * 4
    # 2x double-buffered input + 2x output slabs (input dtype) + ~2 f32 temps.
    resident_need = 4 * slab + 2 * slab_f32 + (2 << 20)
    if resident_need <= budget:
        return _gln_resident(x, gamma, beta, eps, vmem_limit=budget)
    return _gln_tiled_dispatch(x, gamma, beta, eps, budget)


# --------------------------------------------------------------------------
# Reference + self-test.
# --------------------------------------------------------------------------
def _reference(x, gamma, beta, eps=1e-8):
    x32 = x.astype(jnp.float32)
    mean = jnp.mean(x32, axis=(1, 2), keepdims=True)
    std = jnp.sqrt(jnp.var(x32, axis=(1, 2), keepdims=True, ddof=1))
    return (x32 - mean) / (std + eps) * gamma.astype(jnp.float32) \
        + beta.astype(jnp.float32)


if __name__ == "__main__":
    key = jax.random.PRNGKey(0)
    k0, k1, k2, k3, k4 = jax.random.split(key, 5)
    budget = _vmem_budget_bytes()

    # Small shapes consistent with the module: B=2, C=4, T=16 (resident path).
    B, C, T = 2, 4, 16
    x = jax.random.normal(k0, (B, C, T), dtype=jnp.float32)
    gamma = jax.random.normal(k1, (C, 1), dtype=jnp.float32) * 0.1 + 1.0
    beta = jax.random.normal(k2, (C, 1), dtype=jnp.float32) * 0.1

    out = jax.block_until_ready(global_layer_norm(x, gamma, beta))
    ref = _reference(x, gamma, beta)
    assert out.shape == (B, C, T)
    assert jnp.allclose(out, ref, atol=1e-5, rtol=1e-5), "resident path mismatch"

    # Exercise the tiled two-pass path directly (T multiple of 128, 2 tiles).
    B2, C2, T2 = 2, 4, 256
    x2 = jax.random.normal(k3, (B2, C2, T2), dtype=jnp.float32)
    out2 = jax.block_until_ready(_gln_tiled(x2, gamma, beta, 1e-8, 128, C2 * T2, budget))
    ref2 = _reference(x2, gamma, beta)
    assert jnp.allclose(out2, ref2, atol=1e-5, rtol=1e-5), "tiled path mismatch"

    # bf16 I/O (compute in f32, write bf16): halves HBM traffic when memory-bound.
    x_bf16 = x2.astype(jnp.bfloat16)
    out_bf16 = jax.block_until_ready(_gln_tiled(x_bf16, gamma, beta, 1e-8, 128,
                                                C2 * T2, budget))
    ref_bf16 = _reference(x_bf16, gamma, beta)
    assert out_bf16.dtype == jnp.bfloat16
    assert jnp.allclose(out_bf16.astype(jnp.float32), ref_bf16,
                        atol=5e-2, rtol=5e-2), "bf16 mismatch"

    # Awkward T (not a multiple of 128) through the zero-pad tiled dispatch.
    B3, C3, T3 = 2, 4, 200
    x3 = jax.random.normal(k4, (B3, C3, T3), dtype=jnp.float32)
    out3 = jax.block_until_ready(_gln_tiled_dispatch(x3, gamma, beta, 1e-8, budget))
    ref3 = _reference(x3, gamma, beta)
    assert out3.shape == (B3, C3, T3)
    assert jnp.allclose(out3, ref3, atol=1e-5, rtol=1e-5), "padded tiled mismatch"

    print("KERNEL_OK")
</pallas_src>

<mosaic_0001>
module attributes {stable_mosaic.version = 11 : i64} {
  func.func @_gln_resident_kernel(%arg0: i32, %arg1: memref<1x4x16xf32, #tpu.memory_space<vmem>>, %arg2: memref<4x1xf32, #tpu.memory_space<vmem>>, %arg3: memref<4x1xf32, #tpu.memory_space<vmem>>, %arg4: memref<1x4x16xf32, #tpu.memory_space<vmem>>) attributes {dimension_semantics = [#tpu.dimension_semantics<parallel>], iteration_bounds = array<i64: 2>, scalar_prefetch = 0 : i64, scratch_operands = 0 : i64, tpu.core_type = #tpu.core_type<tc>, window_params = [{transform_indices = @transform_0, window_bounds = array<i64: 1, 4, 16>}, {pipeline_mode = #tpu.pipeline_mode<synchronous>, transform_indices = @transform_1, window_bounds = array<i64: 4, 1>}, {pipeline_mode = #tpu.pipeline_mode<synchronous>, transform_indices = @transform_2, window_bounds = array<i64: 4, 1>}, {transform_indices = @transform_3, window_bounds = array<i64: 1, 4, 16>}]} {
    %c0 = arith.constant 0 : index
    %c0_0 = arith.constant 0 : index
    %c0_1 = arith.constant 0 : index
    %0 = vector.load %arg1[%c0, %c0_0, %c0_1] : memref<1x4x16xf32, #tpu.memory_space<vmem>>, vector<1x4x16xf32>
    %1 = vector.shape_cast %0 : vector<1x4x16xf32> to vector<4x16xf32>
    %2 = vector.shape_cast %1 : vector<4x16xf32> to vector<1x4x16xf32>
    %cst = arith.constant dense<0.000000e+00> : vector<1xf32>
    %3 = vector.multi_reduction <add>, %2, %cst [1, 2] : vector<1x4x16xf32> to vector<1xf32>
    %4 = vector.shape_cast %3 : vector<1xf32> to vector<1x1x1xf32>
    %5 = vector.extract %4[0, 0, 0] : f32 from vector<1x1x1xf32>
    %6 = arith.mulf %1, %1 : vector<4x16xf32>
    %7 = vector.shape_cast %6 : vector<4x16xf32> to vector<1x4x16xf32>
    %cst_2 = arith.constant dense<0.000000e+00> : vector<1xf32>
    %8 = vector.multi_reduction <add>, %7, %cst_2 [1, 2] : vector<1x4x16xf32> to vector<1xf32>
    %9 = vector.shape_cast %8 : vector<1xf32> to vector<1x1x1xf32>
    %10 = vector.extract %9[0, 0, 0] : f32 from vector<1x1x1xf32>
    %cst_3 = arith.constant 6.400000e+01 : f32
    %11 = arith.divf %5, %cst_3 : f32
    %12 = arith.mulf %5, %11 : f32
    %13 = arith.subf %10, %12 : f32
    %cst_4 = arith.constant 6.300000e+01 : f32
    %14 = arith.divf %13, %cst_4 : f32
    %cst_5 = arith.constant 0.000000e+00 : f32
    %15 = arith.maximumf %14, %cst_5 : f32
    %16 = math.sqrt %15 : f32
    %cst_6 = arith.constant 9.99999993E-9 : f32
    %17 = arith.addf %16, %cst_6 : f32
    %cst_7 = arith.constant 1.000000e+00 : f32
    %18 = arith.divf %cst_7, %17 : f32
    %c0_8 = arith.constant 0 : index
    %c0_9 = arith.constant 0 : index
    %19 = vector.load %arg2[%c0_8, %c0_9] : memref<4x1xf32, #tpu.memory_space<vmem>>, vector<4x1xf32>
    %c0_10 = arith.constant 0 : index
    %c0_11 = arith.constant 0 : index
    %20 = vector.load %arg3[%c0_10, %c0_11] : memref<4x1xf32, #tpu.memory_space<vmem>>, vector<4x1xf32>
    %21 = vector.broadcast %18 : f32 to vector<4x1xf32>
    %22 = arith.mulf %19, %21 : vector<4x1xf32>
    %23 = vector.broadcast %11 : f32 to vector<4x1xf32>
    %24 = arith.mulf %23, %22 : vector<4x1xf32>
    %25 = arith.subf %20, %24 : vector<4x1xf32>
    %c0_12 = arith.constant 0 : index
    %c0_13 = arith.constant 0 : index
    %c0_14 = arith.constant 0 : index
    %26 = vector.load %arg1[%c0_12, %c0_13, %c0_14] : memref<1x4x16xf32, #tpu.memory_space<vmem>>, vector<1x4x16xf32>
    %27 = vector.shape_cast %26 : vector<1x4x16xf32> to vector<4x16xf32>
    %28 = vector.broadcast %22 : vector<4x1xf32> to vector<4x16xf32>
    %29 = arith.mulf %27, %28 : vector<4x16xf32>
    %30 = vector.broadcast %25 : vector<4x1xf32> to vector<4x16xf32>
    %31 = arith.addf %29, %30 : vector<4x16xf32>
    %c0_15 = arith.constant 0 : index
    %c0_16 = arith.constant 0 : index
    %c0_17 = arith.constant 0 : index
    %32 = vector.load %arg4[%c0_15, %c0_16, %c0_17] : memref<1x4x16xf32, #tpu.memory_space<vmem>>, vector<1x4x16xf32>
    %33 = vector.shape_cast %32 : vector<1x4x16xf32> to vector<4x16xf32>
    %34 = vector.shape_cast %31 : vector<4x16xf32> to vector<1x4x16xf32>
    tpu.vector_store %arg4[%c0_15, %c0_16, %c0_17], %34 {strides = array<i32>} : memref<1x4x16xf32, #tpu.memory_space<vmem>>, vector<1x4x16xf32>,
    return
  }
  func.func @transform_0(%arg0: i32) -> (i32, i32, i32) {
    %c0_i32 = arith.constant 0 : i32
    %c0_i32_0 = arith.constant 0 : i32
    %c0_i32_1 = arith.constant 0 : i32
    return %arg0, %c0_i32, %c0_i32_0 : i32, i32, i32
  }
  func.func @transform_1(%arg0: i32) -> (i32, i32) {
    %c0_i32 = arith.constant 0 : i32
    %c0_i32_0 = arith.constant 0 : i32
    %c0_i32_1 = arith.constant 0 : i32
    return %c0_i32, %c0_i32_0 : i32, i32
  }
  func.func @transform_2(%arg0: i32) -> (i32, i32) {
    %c0_i32 = arith.constant 0 : i32
    %c0_i32_0 = arith.constant 0 : i32
    %c0_i32_1 = arith.constant 0 : i32
    return %c0_i32, %c0_i32_0 : i32, i32
  }
  func.func @transform_3(%arg0: i32) -> (i32, i32, i32) {
    %c0_i32 = arith.constant 0 : i32
    %c0_i32_0 = arith.constant 0 : i32
    %c0_i32_1 = arith.constant 0 : i32
    return %arg0, %c0_i32, %c0_i32_0 : i32, i32, i32
  }
}

</mosaic_0001>

<bundles_post_ra>
// kernel: tpu_custom_call.1
= control target key start
LH: loop header
LB: loop body
LE: loop exit
PB: predicated region body
PF: predicated region fallthrough
CT: control target
= control target key end

     0   :  { %8 = vsyncpa [#allocation3], 0  ;;  %s560_s0 = inlined_call_operand.vmem [shape: f32[2,4,16], index: 0, kind: input, shape index: {}]   ;;  %s561_s1 = inlined_call_operand.vmem [shape: f32[4,1], index: 1, kind: input, shape index: {}]   ;;  %s562_s2 = inlined_call_operand.vmem [shape: f32[4,1], index: 2, kind: input, shape index: {}]   ;;  %s563_s3 = inlined_call_operand.hbm [shape: f32[2,4,16], index: 3, kind: output, shape index: {}]  }
   0x1   :  { %10 = vsyncpa [#allocation3 + $0x1], 0  ;;  %s454_s12 = smov 0   ;;  %s456_s13 = smov 0  }
   0x2   :  { %s458_s14 = smov 0   ;;  %s460_s15 = smov 0  }
   0x3 LB: > { %s475_s16 = sadd.s32 4294967295, %s429_s15   ;;  %s304_s17 = sadd.s32 4294967294, %s429_s15   ;;  %s429_s15 = sphi %s460_s15, %s569_s15   ;;  %s425_s14 = sphi %s458_s14, %s568_s14   ;;  %s421_s13 = sphi %s456_s13, %s567_s13   ;;  %s417_s12 = sphi %s454_s12, %s566_s12  }
   0x4   : > { %s479_s18 = sadd.s32 1, %s429_s15   ;;  %s91_s19 = sadd.s32 1, %s425_s14 }
   0x5   : > { %s88_s20 = ssub.s32 %s429_s15, %s479_s18  ;;  %p101_p0 = scmp.ne.s32.totalorder %s425_s14, %s421_s13 }
   0x6   : > { %p89_p1 = scmp.eq.s32.totalorder %s88_s20, 0  ;;  %p102_p2 = scmp.eq.s32.totalorder %s475_s16, 1 }
   0x7   : > { %p107_p3 = scmp.ne.s32.totalorder %s421_s13, %s417_s12  ;;  %p108_p4 = scmp.eq.s32.totalorder %s304_s17, 1 }
   0x8   : > { %s490_s21 = scalar_select %p89_p1, %s425_s14, %s91_s19  }
   0x9   : > { %p492_p5 = por %p102_p2, %p101_p0  ;;  %p496_p6 = por %p108_p4, %p107_p3 }
   0xa   : > { %p307_p7 = scmp.ge.s32.totalorder %s429_s15, 1  ;;  %p139_p8 = scmp.lt.s32.totalorder %s429_s15, 3 }
   0xc   : > { %p140_p9 = pnand %p307_p7, %p139_p8 }
   0xd   : > { %p162_p10 = scmp.lt.s32.totalorder (!%p140_p9), %s475_s16, 1  ;;  %s431_s8 = smov (!%p140_p9), 0.0  }
   0xe   : > { %143 = sbr.rel (%p140_p9) target bundleno = 516 (0x204), region = 32  ;;  %s159_s26 = sand.u32 (!%p140_p9), 1, %s421_s13  }
   0xf   : > { %s308_s27 = sshll.u32 (!%p140_p9), %s159_s26, 2 }
  0x13   : > { %s163_s24 = scalar_select %p162_p10, %s475_s16, 1  ;;  %vm167_vm0 = vcmask 125952   ;;  %v432_v19 = vmov 0   ;;  %v211_v27 = vld [vmem:[%s561_s1] sm:$0xf] }
  0x14   : > { %363 = vset.pattern.permute.xlu1 %v432_v19  ;;  %364 = vset.pattern.permute.xlu0 %v432_v19  ;;  %v212_v31 = vld [vmem:[%s562_s2] sm:$0xf] }
  0x15   : > { %s309_s25 = sshll.u32 %s163_s24, 2 }
  0x16   : > { %s165_s28 = scalar_lea.vmem %s560_s0, %s309_s25 }
  0x17   : > { %v507_v0 = vld [vmem:[%s165_s28] sm:$0xf]  ;;  %s311_s28 = sshll.u32 %s475_s16, 6  ;;  %s433_s16 = smov [#allocation2]  }
  0x18   : > { %v168_v1 = vsel %vm167_vm0, %v507_v0, 0.0  ;;  %v178_v2 = vmul.f32 %v507_v0, %v507_v0 }
  0x19   : > { %169 = vadd.xlane.f32.xlu0 %v168_v1 }
  0x1a   : > { %v179_v3 = vsel %vm167_vm0, %v178_v2, 0.0 }
  0x1d   : > { %180 = vadd.xlane.f32.xlu0 %v179_v3 }
  0xa2   : > { %v170_v4 = vpop.xlane.xlu0 %169 }
  0xa3   : > { %v171_v5 = vrot.slane %v170_v4, 4 }
  0xa5   : > { %v172_v6 = vadd.f32 %v171_v5, %v170_v4 }
  0xa6   : > { %v181_v7 = vpop.xlane.xlu0 %180 }
  0xa7   : > { %v173_v8 = vrot.slane %v172_v6, 2  ;;  %v182_v9 = vrot.slane %v181_v7, 4 }
  0xa9   : > { %v183_v10 = vadd.f32 %v182_v9, %v181_v7  ;;  %v174_v11 = vadd.f32 %v173_v8, %v172_v6 }
  0xab   : > { %v184_v12 = vrot.slane %v183_v10, 2  ;;  %v175_v13 = vrot.slane %v174_v11, 1 }
  0xad   : > { %v185_v14 = vadd.f32 %v184_v12, %v183_v10  ;;  %v176_v15 = vadd.f32 %v175_v13, %v174_v11 }
  0xaf   : > { %314 = vpush %v176_v15  ;;  %v186_v16 = vrot.slane %v185_v14, 1 }
  0xb1   : > { %v187_v17 = vadd.f32 %v186_v16, %v185_v14 }
  0xb3   : > { %316 = vpush %v187_v17 }
  0xe0   : > { %s514_s29 = spop %314 }
  0xe1   : > { %s191_s30 = smul.f32 0.015625, %s514_s29 }
  0xe3   : > { %s192_s4 = smul.f32 %s514_s29, %s191_s30  ;;  %v215_v30 = vstv %s191_s30  ;;  %s161_s29 = scalar_lea.vmem [#allocation2], %s308_s27 }
  0xe4   : > { %s317_s5 = spop %316 }
  0xe5   : > { %s193_s6 = ssub.f32 %s317_s5, %s192_s4  ;;  %s245_s4 = sshll.u32 %s161_s29, 4  ;;  %s246_s4 = int_to_ptr.vmem [resolvable:$true] %s245_s4 }
  0xe7   : > { %s196_s7 = smul.f32 0.015873017, %s193_s6  ;;  %s243_s6 = scalar_lea.hbm %s563_s3, %s311_s28 }
  0xe9   : > { %s197_s9 = smax.f32 %s431_s8, %s196_s7  ;;  %s232_s7 = scalar_lea.sflag [#allocation3], %s159_s26 }
  0xea   : > { %v198_v18 = vstv %s197_s9  ;;  %s369_s8 = scalar_lea.vmem %s246_s4, 64  ;;  %s373_s9 = sshll.u32 %s433_s16, 4  ;;  %s374_s9 = int_to_ptr.vmem [resolvable:$false] %s373_s9 }
  0xeb   : > { %365 = vrsqrt.f32 %v198_v18  ;;  %vm201_vm1 = vcmp.eq.f32.partialorder %v198_v18, inf  ;;  %v204_v22 = vand.u32 2147483648, %v198_v18  ;;  %vm203_vm2 = vcmp.eq.f32.partialorder %v198_v18, 0.0  ;;  %p370_p11 = scmp.ne.s32.totalorder %s246_s4, %s369_s8  ;;  %p376_p0 = scmp.lt.s32.totalorder %s246_s4, %s374_s9 }
  0xed   : > { %p371_p12 = pnand %p370_p11, %p492_p5 }
  0xef   : > { %p372_p13 = pneg %p371_p12 }
  0xf8   : > { %v366_v20 = vpop.eup %365 }
  0xf9   : > { %v200_v21 = vmul.f32 %v366_v20, %v198_v18 }
  0xfb   : > { %v202_v23 = vsel %vm201_vm1, %v198_v18, %v200_v21 }
  0xfc   : > { %v205_v24 = vsel %vm203_vm2, %v204_v22, %v202_v23 }
  0xfd   : > { %318 = vpush %v205_v24 }
 0x12e   : > { %s319_s10 = spop %318 }
 0x12f   : > { %s207_s11 = sadd.f32 1e-08, %s319_s10  ;;  %s375_s10 = scalar_lea.vmem %s374_s9, 128 }
 0x130   : > { %p377_p1 = scmp.lt.s32.totalorder %s375_s10, %s369_s8 }
 0x131   : > { %v208_v25 = vstv %s207_s11 }
 0x132   : > { %367 = vrcp.f32 %v208_v25  ;;  %p378_p2 = por %p377_p1, %p376_p0 }
 0x134   : > { %p379_p3 = pnand %p378_p2, %p372_p13 }
 0x13f   : > { %v368_v26 = vpop.eup %367 }
 0x140   : > { %320 = vpush %v368_v26 }
 0x171   : > { %s321_s20 = spop %320 }
 0x172   : > { %v213_v28 = vstv %s321_s20 }
 0x173   : > { %v214_v29 = vmul.f32 %v213_v28, %v211_v27 }
 0x175   : > { %v216_v32 = vmul.f32 %v215_v30, %v214_v29  ;;  %220 = vperm.xlu1 %363, %v214_v29  }
 0x177   : > { %v217_v33 = vsub.f32 %v212_v31, %v216_v32 }
 0x179   : > { %226 = vperm.xlu1 %363, %v217_v33  }
 0x1f0   : > { %v221_v34 = vpop.permute.xlu1 %220 }
 0x1f1   : > { %v223_v35 = vmul.f32 %v221_v34, %v507_v0 }
 0x1f4   : > { %v227_v36 = vpop.permute.xlu1 %226 }
 0x1f5   : > { %v229_v37 = vadd.f32 %v227_v36, %v223_v35 }
 0x1f7   : > { %230 = vst.msk [vmem:[%s161_s29] sm:$0xf] %vm167_vm0, %v229_v37 }
 0x1f8   : > { %382 = shalt.err (!%p379_p3)
}
 0x1f9   : > { %s383_s11 = scalar_lea.hbm %s243_s6, 64  ;;  %s387_s20 = scalar_lea.hbm %s563_s3, 128 }
 0x1fa   : > { %p384_p4 = scmp.ne.s32.totalorder %s243_s6, %s383_s11  ;;  %p388_p9 = scmp.lt.s32.totalorder %s243_s6, %s563_s3 }
 0x1fb   : > { %p389_p10 = scmp.lt.s32.totalorder %s387_s20, %s383_s11 }
 0x1fc   : > { %p385_p7 = pnand %p384_p4, %p492_p5 }
 0x1fd   : > { %p390_p11 = por %p389_p10, %p388_p9 }
 0x1fe   : > { %p386_p8 = pneg %p385_p7 }
 0x200   : > { %p391_p12 = pnand %p390_p11, %p386_p8 }
 0x202   : > { %394 = shalt.err (!%p391_p12)
}
 0x203   : > { %322 = dma.vmem_to_hbm [thread:$0]  (%p492_p5), %s246_s4, 64, %s243_s6, %s232_s7  }
 0x204 PF: > { %p328_p13 = scmp.ge.s32.totalorder %s429_s15, 2  ;;  %s257_s26 = sand.u32 1, %s417_s12  }
 0x205   : > { %s258_s27 = scalar_lea.sflag [#allocation3], %s257_s26 }
 0x206   : > { %p325_p0 = pnand %p328_p13, %p496_p6 }
 0x208   : > { %p326_p1 = pneg %p325_p0 }
 0x20a   : > { %412 = dma.done.wait (%p326_p1), %s258_s27, 64  }
 0x20b   : > { %414 = vsyncadd (%p326_p1), %s258_s27, 4294967232  ;;  %p13_p2 = scmp.ge.s32.totalorder %s479_s18, 4   ;;  %s566_s12 = smov %s421_s13 }
 0x20c   : > { %s567_s13 = smov %s425_s14  ;;  %s568_s14 = smov %s490_s21 }
 0x20d   : > { %s569_s15 = smov %s479_s18  ;;  %15 = sbr.rel (!%p13_p2) target bundleno = 3 (0x3), region = 67 }
 0x212   :  { %263 = vsyncpa [#allocation3], 1 }
 0x213   :  { %265 = vsyncpa [#allocation3 + $0x1], 1 }

</bundles_post_ra>
